<compile_context>
chip_gen: v5e
topology: v5e:2x2
jax: 0.10.0
libtpu: 0.0.40
codegen_flags: <defaults>
</compile_context>

<pallas_src>
import functools

import jax
import jax.numpy as jnp
from jax.experimental import pallas as pl
from jax.experimental.pallas import tpu as pltpu


def _focal_loss_kernel(logits_ref, target_ref, out_ref, acc_ref,
                       *, hw, tile_spatial, tiles_per_split):
    s = pl.program_id(0)   # core split (parallel)
    i = pl.program_id(1)   # sample
    j = pl.program_id(2)   # spatial tile within split

    @pl.when(jnp.logical_and(i == 0, j == 0))
    def _():
        acc_ref[...] = jnp.zeros_like(acc_ref)

    x = logits_ref[0].astype(jnp.float32)      # (C, T)  C on sublanes, T on lanes
    t = target_ref[0]                          # (1, T)  int32

    # log-softmax over the class (sublane) axis, per lane/column.
    m = jnp.max(x, axis=0, keepdims=True)                               # (1, T)
    lse = jnp.log(jnp.sum(jnp.exp(x - m), axis=0, keepdims=True)) + m   # (1, T)

    # Gather the target-class logit via a one-hot select over sublanes.
    cls = jax.lax.broadcasted_iota(jnp.int32, x.shape, dimension=0)     # (C, T)
    x_t = jnp.sum(jnp.where(cls == t, x, 0.0), axis=0, keepdims=True)   # (1, T)

    # Mask columns beyond H*W (ragged last tile and clamped duplicate tiles).
    lane = jax.lax.broadcasted_iota(jnp.int32, (1, tile_spatial), dimension=1)
    gcol = (s * tiles_per_split + j) * tile_spatial + lane
    loss_vec = jnp.where(gcol < hw, lse - x_t, 0.0)                     # (1, T)

    # Elementwise vector accumulation (no per-step cross-lane reduce).
    acc_ref[...] += loss_vec

    @pl.when(jnp.logical_and(i == pl.num_programs(1) - 1,
                             j == pl.num_programs(2) - 1))
    def _():
        out_ref[...] = jnp.full((1, 1, 128), jnp.sum(acc_ref[...]),
                                dtype=jnp.float32)


def focal_loss(logits_nchw, target_nhw, *, tile_spatial=32768, num_splits=2):
    """Matches focalLoss(class_num=C, ignoreIndex=None, size_average=True).

    logits_nchw : (N, C, H, W) float
    target_nhw  : (N, H, W)    int
    returns scalar float32 loss
    """
    n, c, h, w = logits_nchw.shape
    hw = h * w
    rows = n * hw
    itemsize = jnp.dtype(logits_nchw.dtype).itemsize

    # Spatial tile: multiple of 128 lanes, no bigger than needed to give each
    # split one tile, and <= ~4 MiB of logits per buffer (VMEM safety on all
    # generations with double buffering).
    max_by_vmem = max(128, ((4 << 20) // (c * itemsize)) // 128 * 128)
    max_by_hw = pl.cdiv(hw, 128 * num_splits) * 128
    tile = max(128, min((tile_spatial // 128) * 128, max_by_hw, max_by_vmem))

    total_tiles = pl.cdiv(hw, tile)                    # real blocks in HBM
    tiles_per_split = pl.cdiv(total_tiles, num_splits)
    last_block = total_tiles - 1

    # Free reshapes (no transpose, no pad, no extra HBM pass).
    logits = logits_nchw.reshape(n, c, hw)
    target = target_nhw.reshape(n, 1, hw).astype(jnp.int32)

    kernel = functools.partial(_focal_loss_kernel, hw=hw, tile_spatial=tile,
                               tiles_per_split=tiles_per_split)

    grid = (num_splits, n, tiles_per_split)

    # Block index is clamped onto the last real block so no DMA ever maps past
    # the array; duplicated / ragged lanes are masked to zero in the kernel.
    def _blk(s, i, j):
        return (i, 0, jnp.minimum(s * tiles_per_split + j, last_block))

    partials = pl.pallas_call(
        kernel,
        out_shape=jax.ShapeDtypeStruct((num_splits, 1, 128), jnp.float32),
        grid_spec=pltpu.PrefetchScalarGridSpec(
            num_scalar_prefetch=0,
            grid=grid,
            in_specs=[
                pl.BlockSpec((1, c, tile), _blk),
                pl.BlockSpec((1, 1, tile), _blk),
            ],
            out_specs=pl.BlockSpec((1, 1, 128), lambda s, i, j: (s, 0, 0)),
            scratch_shapes=[pltpu.VMEM((1, tile), jnp.float32)],
        ),
        compiler_params=pltpu.CompilerParams(
            dimension_semantics=("parallel", "arbitrary", "arbitrary"),
        ),
        cost_estimate=pl.CostEstimate(
            flops=6 * n * c * hw,
            transcendentals=n * hw * (c + 1),
            bytes_accessed=n * c * hw * itemsize + n * hw * 4,
        ),
    )(logits, target)

    # size_average=True -> mean over all N*H*W pixels (OOB lanes were masked).
    return jnp.sum(partials[:, 0, 0]) / jnp.float32(rows)


def _reference_loss(logits_nchw, target_nhw):
    # Pure-JAX reference of the PyTorch forward (ignoreIndex=None).
    n, c, h, w = logits_nchw.shape
    p = jax.nn.softmax(logits_nchw.astype(jnp.float32), axis=1)
    p = jnp.transpose(p, (0, 2, 3, 1)).reshape(-1, c)
    ids = target_nhw.reshape(-1)
    probs = jnp.take_along_axis(p, ids[:, None], axis=1)[:, 0]
    return jnp.mean(-jnp.log(probs))


if __name__ == "__main__":
    key = jax.random.PRNGKey(0)
    k_x, k_t = jax.random.split(key)
    N, C, H, W = 2, 4, 16, 16
    x = jax.random.normal(k_x, (N, C, H, W), dtype=jnp.float32)
    t = jax.random.randint(k_t, (N, H, W), 0, C, dtype=jnp.int32)

    # NOTE: alpha (ones(C,1)) and gamma=2 exist in __init__ but do not affect
    # the reference forward's returned loss, so no parameters are needed.
    loss = jax.block_until_ready(focal_loss(x, t))

    ref = _reference_loss(x, t)
    assert jnp.allclose(loss, ref, atol=1e-5, rtol=1e-5), (loss, ref)
    print("KERNEL_OK")
</pallas_src>

<mosaic_0001>
module attributes {stable_mosaic.version = 11 : i64} {
  func.func @_focal_loss_kernel(%arg0: i32, %arg1: i32, %arg2: i32, %arg3: memref<1x4x128xf32, #tpu.memory_space<vmem>>, %arg4: memref<1x1x128xi32, #tpu.memory_space<vmem>>, %arg5: memref<1x1x128xf32, #tpu.memory_space<vmem>>, %arg6: memref<1x128xf32, #tpu.memory_space<vmem>>) attributes {dimension_semantics = [#tpu.dimension_semantics<parallel>, #tpu.dimension_semantics<arbitrary>, #tpu.dimension_semantics<arbitrary>], iteration_bounds = array<i64: 2, 2, 1>, scalar_prefetch = 0 : i64, scratch_operands = 1 : i64, tpu.core_type = #tpu.core_type<tc>, window_params = [{transform_indices = @transform_0, window_bounds = array<i64: 1, 4, 128>}, {transform_indices = @transform_1, window_bounds = array<i64: 1, 1, 128>}, {transform_indices = @transform_2, window_bounds = array<i64: 1, 1, 128>}]} {
    %c0_i32 = arith.constant 0 : i32
    %0 = arith.cmpi eq, %arg1, %c0_i32 : i32
    %c0_i32_0 = arith.constant 0 : i32
    %1 = arith.cmpi eq, %arg2, %c0_i32_0 : i32
    %2 = arith.andi %0, %1 : i1
    %3 = arith.extui %2 : i1 to i32
    %c0_i32_1 = arith.constant 0 : i32
    %4 = arith.cmpi ne, %3, %c0_i32_1 : i32
    scf.if %4 {
      %cst_18 = arith.constant 0.000000e+00 : f32
      %44 = vector.broadcast %cst_18 : f32 to vector<1x128xf32>
      %c0_19 = arith.constant 0 : index
      %c0_20 = arith.constant 0 : index
      %45 = vector.load %arg6[%c0_19, %c0_20] : memref<1x128xf32, #tpu.memory_space<vmem>>, vector<1x128xf32>
      tpu.vector_store %arg6[%c0_19, %c0_20], %44 {strides = array<i32>} : memref<1x128xf32, #tpu.memory_space<vmem>>, vector<1x128xf32>,
    } else {
    }
    %c0 = arith.constant 0 : index
    %c0_2 = arith.constant 0 : index
    %c0_3 = arith.constant 0 : index
    %5 = vector.load %arg3[%c0, %c0_2, %c0_3] : memref<1x4x128xf32, #tpu.memory_space<vmem>>, vector<1x4x128xf32>
    %6 = vector.shape_cast %5 : vector<1x4x128xf32> to vector<4x128xf32>
    %c0_4 = arith.constant 0 : index
    %c0_5 = arith.constant 0 : index
    %c0_6 = arith.constant 0 : index
    %7 = vector.load %arg4[%c0_4, %c0_5, %c0_6] : memref<1x1x128xi32, #tpu.memory_space<vmem>>, vector<1x1x128xi32>
    %8 = vector.shape_cast %7 : vector<1x1x128xi32> to vector<1x128xi32>
    %cst = arith.constant dense<0xFF800000> : vector<128xf32>
    %9 = vector.multi_reduction <maximumf>, %6, %cst [0] : vector<4x128xf32> to vector<128xf32>
    %10 = vector.shape_cast %9 : vector<128xf32> to vector<1x128xf32>
    %11 = vector.broadcast %10 : vector<1x128xf32> to vector<4x128xf32>
    %12 = arith.subf %6, %11 : vector<4x128xf32>
    %13 = math.exp %12 : vector<4x128xf32>
    %cst_7 = arith.constant dense<0.000000e+00> : vector<128xf32>
    %14 = vector.multi_reduction <add>, %13, %cst_7 [0] : vector<4x128xf32> to vector<128xf32>
    %15 = vector.shape_cast %14 : vector<128xf32> to vector<1x128xf32>
    %16 = math.log %15 : vector<1x128xf32>
    %17 = arith.addf %16, %10 : vector<1x128xf32>
    %18 = tpu.iota {dimensions = array<i32: 0>} : vector<4x128xi32>
    %19 = vector.broadcast %8 : vector<1x128xi32> to vector<4x128xi32>
    %20 = arith.cmpi eq, %18, %19 : vector<4x128xi32>
    %cst_8 = arith.constant 0.000000e+00 : f32
    %21 = vector.broadcast %cst_8 : f32 to vector<4x128xf32>
    %22 = arith.select %20, %6, %21 : vector<4x128xi1>, vector<4x128xf32>
    %cst_9 = arith.constant dense<0.000000e+00> : vector<128xf32>
    %23 = vector.multi_reduction <add>, %22, %cst_9 [0] : vector<4x128xf32> to vector<128xf32>
    %24 = vector.shape_cast %23 : vector<128xf32> to vector<1x128xf32>
    %25 = tpu.iota {dimensions = array<i32: 1>} : vector<1x128xi32>
    %c1_i32 = arith.constant 1 : i32
    %26 = arith.muli %arg0, %c1_i32 : i32
    %27 = arith.addi %26, %arg2 : i32
    %c128_i32 = arith.constant 128 : i32
    %28 = arith.muli %27, %c128_i32 : i32
    %29 = vector.broadcast %28 : i32 to vector<1x128xi32>
    %30 = arith.addi %29, %25 : vector<1x128xi32>
    %c256_i32 = arith.constant 256 : i32
    %31 = vector.broadcast %c256_i32 : i32 to vector<1x128xi32>
    %32 = arith.cmpi slt, %30, %31 : vector<1x128xi32>
    %33 = arith.subf %17, %24 : vector<1x128xf32>
    %cst_10 = arith.constant 0.000000e+00 : f32
    %34 = vector.broadcast %cst_10 : f32 to vector<1x128xf32>
    %35 = arith.select %32, %33, %34 : vector<1x128xi1>, vector<1x128xf32>
    %c0_11 = arith.constant 0 : index
    %c0_12 = arith.constant 0 : index
    %36 = vector.load %arg6[%c0_11, %c0_12] : memref<1x128xf32, #tpu.memory_space<vmem>>, vector<1x128xf32>
    %37 = arith.addf %36, %35 : vector<1x128xf32>
    %c0_13 = arith.constant 0 : index
    %c0_14 = arith.constant 0 : index
    %38 = vector.load %arg6[%c0_13, %c0_14] : memref<1x128xf32, #tpu.memory_space<vmem>>, vector<1x128xf32>
    tpu.vector_store %arg6[%c0_13, %c0_14], %37 {strides = array<i32>} : memref<1x128xf32, #tpu.memory_space<vmem>>, vector<1x128xf32>,
    %c1_i32_15 = arith.constant 1 : i32
    %39 = arith.cmpi eq, %arg1, %c1_i32_15 : i32
    %c0_i32_16 = arith.constant 0 : i32
    %40 = arith.cmpi eq, %arg2, %c0_i32_16 : i32
    %41 = arith.andi %39, %40 : i1
    %42 = arith.extui %41 : i1 to i32
    %c0_i32_17 = arith.constant 0 : i32
    %43 = arith.cmpi ne, %42, %c0_i32_17 : i32
    scf.if %43 {
      %c0_18 = arith.constant 0 : index
      %c0_19 = arith.constant 0 : index
      %44 = vector.load %arg6[%c0_18, %c0_19] : memref<1x128xf32, #tpu.memory_space<vmem>>, vector<1x128xf32>
      %45 = vector.shape_cast %44 : vector<1x128xf32> to vector<1x1x128xf32>
      %cst_20 = arith.constant dense<0.000000e+00> : vector<1xf32>
      %46 = vector.multi_reduction <add>, %45, %cst_20 [1, 2] : vector<1x1x128xf32> to vector<1xf32>
      %47 = vector.shape_cast %46 : vector<1xf32> to vector<1x1x1xf32>
      %48 = vector.extract %47[0, 0, 0] : f32 from vector<1x1x1xf32>
      %49 = vector.broadcast %48 : f32 to vector<1x1x128xf32>
      %c0_21 = arith.constant 0 : index
      %c0_22 = arith.constant 0 : index
      %c0_23 = arith.constant 0 : index
      %50 = vector.load %arg5[%c0_21, %c0_22, %c0_23] : memref<1x1x128xf32, #tpu.memory_space<vmem>>, vector<1x1x128xf32>
      tpu.vector_store %arg5[%c0_21, %c0_22, %c0_23], %49 {strides = array<i32>} : memref<1x1x128xf32, #tpu.memory_space<vmem>>, vector<1x1x128xf32>,
    } else {
    }
    return
  }
  func.func @transform_0(%arg0: i32, %arg1: i32, %arg2: i32) -> (i32, i32, i32) {
    %c1_i32 = arith.constant 1 : i32
    %0 = arith.muli %arg0, %c1_i32 : i32
    %1 = arith.addi %0, %arg2 : i32
    %c1_i32_0 = arith.constant 1 : i32
    %2 = arith.minsi %1, %c1_i32_0 : i32
    %c0_i32 = arith.constant 0 : i32
    %c0_i32_1 = arith.constant 0 : i32
    return %arg1, %c0_i32, %2 : i32, i32, i32
  }
  func.func @transform_1(%arg0: i32, %arg1: i32, %arg2: i32) -> (i32, i32, i32) {
    %c1_i32 = arith.constant 1 : i32
    %0 = arith.muli %arg0, %c1_i32 : i32
    %1 = arith.addi %0, %arg2 : i32
    %c1_i32_0 = arith.constant 1 : i32
    %2 = arith.minsi %1, %c1_i32_0 : i32
    %c0_i32 = arith.constant 0 : i32
    %c0_i32_1 = arith.constant 0 : i32
    return %arg1, %c0_i32, %2 : i32, i32, i32
  }
  func.func @transform_2(%arg0: i32, %arg1: i32, %arg2: i32) -> (i32, i32, i32) {
    %c0_i32 = arith.constant 0 : i32
    %c0_i32_0 = arith.constant 0 : i32
    %c0_i32_1 = arith.constant 0 : i32
    return %arg0, %c0_i32, %c0_i32_0 : i32, i32, i32
  }
}

</mosaic_0001>

<bundles_post_ra>
// kernel: tpu_custom_call.1
= control target key start
LH: loop header
LB: loop body
LE: loop exit
PB: predicated region body
PF: predicated region fallthrough
CT: control target
= control target key end

     0   :  { %7 = vsyncpa [#allocation4], 0  ;;  %s983_s0 = inlined_call_operand.hbm [shape: f32[2,4,256], index: 0, kind: input, shape index: {}]   ;;  %s984_s1 = inlined_call_operand.hbm [shape: s32[2,1,256], index: 1, kind: input, shape index: {}]   ;;  %s985_s2 = inlined_call_operand.hbm [shape: f32[2,1,128], index: 2, kind: output, shape index: {}]  }
   0x1   :  { %9 = vsyncpa [#allocation4 + $0x1], 0 }
   0x2   :  { %10 = vsyncpa [#allocation7], 0 }
   0x3   :  { %12 = vsyncpa [#allocation7 + $0x1], 0 }
   0x4   :  { %13 = vsyncpa [#allocation5], 0 }
   0x5   :  { %15 = vsyncpa [#allocation5 + $0x1], 0  ;;  %s771_s9 = smov 0   ;;  %s773_s10 = smov 0  }
   0x6   :  { %s775_s11 = smov 0   ;;  %s777_s12 = smov 0  }
   0x7   :  { %s779_s13 = smov 0   ;;  %s781_s14 = smov 0  }
   0x8   :  { %s783_s15 = smov 0   ;;  %s785_s16 = smov 0  }
   0x9   :  { %s787_s17 = smov 0   ;;  %s789_s18 = smov 0  }
   0xa   :  { %s791_s19 = smov 0  }
   0xb LB: > { %989 = sst [smem:[#allocation12_spill]] %s749_s18  ;;  %s435_s20 = sadd.s32 4294967295, %s753_s19   ;;  %s753_s19 = sphi %s791_s19, %s21_s19   ;;  %s749_s18 = sphi %s789_s18, %s999_s18   ;;  %s745_s17 = sphi %s787_s17, %s1007_s17   ;;  %s741_s16 = sphi %s785_s16, %s997_s16   ;;  %s737_s15 = sphi %s783_s15, %s1006_s15   ;;  %s733_s14 = sphi %s781_s14, %s1005_s14   ;;  %s729_s13 = sphi %s779_s13, %s1004_s13   ;;  %s725_s12 = sphi %s777_s12, %s1003_s12   ;;  %s721_s11 = sphi %s775_s11, %s1002_s11   ;;  %s717_s10 = sphi %s773_s10, %s1001_s10   ;;  %s713_s9 = sphi %s771_s9, %s1000_s9  }
   0xc   : > { %s436_s21 = sadd.s32 4294967294, %s753_s19   ;;  %s36_s22 = sadd.s32 1, %s745_s17 }
   0xd   : > { %s40_s23 = sadd.s32 1, %s749_s18  ;;  %p38_p0 = scmp.ge.s32.totalorder %s36_s22, 2 }
   0xe   : > { %p45_p1 = scmp.lt.s32.totalorder %s749_s18, 1  ;;  %s55_s24 = sadd.s32 1, %s733_s14 }
   0xf   : > { %p62_p2 = scmp.ne.s32.totalorder %s733_s14, %s729_s13  ;;  %s1009_s22 = smov (%p38_p0, %s36_s22), 0 }
  0x10   : > { %990 = sst [smem:[#allocation13_spill]] %s1009_s22  ;;  %s1011_s23 = smov (!%p38_p0, %s40_s23), %s749_s18 }
  0x11   : > { %s836_s25 = scalar_select %p45_p1, %s749_s18, 1 }
  0x12   : > { %p42_p3 = scmp.ge.s32.totalorder %s1011_s23, 2  ;;  %s50_s26 = ssub.s32 %s745_s17, %s1009_s22 }
  0x13   : > { %p63_p4 = scmp.eq.s32.totalorder %s753_s19, 0  ;;  %p68_p5 = scmp.ne.s32.totalorder %s729_s13, %s725_s12 }
  0x14   : > { %s1013_s23 = smov (%p42_p3, %s1011_s23), 0  ;;  %p69_p7 = scmp.eq.s32.totalorder %s435_s20, 0 }
  0x15   : > { %991 = sst [smem:[#allocation14_spill]] %s1013_s23  ;;  %p844_p6 = por %p63_p4, %p62_p2 }
  0x16   : > { %p48_p8 = scmp.lt.s32.totalorder %s1013_s23, 1  ;;  %s112_s28 = ssub.s32 %s749_s18, %s1013_s23 }
  0x17   : > { %p851_p9 = por %p69_p7, %p68_p5  ;;  %p113_p10 = scmp.eq.s32.totalorder %s112_s28, 0 }
  0x18   : > { %s49_s30 = scalar_select %p48_p8, %s1013_s23, 1 }
  0x19   : > { %s115_s3 = sadd.s32 1, %s721_s11  ;;  %p125_p11 = scmp.ne.s32.totalorder %s721_s11, %s717_s10 }
  0x1a   : > { %s51_s4 = ssub.s32 %s836_s25, %s49_s30  ;;  %p126_p12 = scmp.eq.s32.totalorder %s435_s20, 3 }
  0x1b   : > { %s52_s5 = sor.u32 %s51_s4, %s50_s26  ;;  %p131_p13 = scmp.ne.s32.totalorder %s717_s10, %s713_s9 }
  0x1c   : > { %p53_p0 = scmp.eq.s32.totalorder %s52_s5, 0  ;;  %p862_p1 = por %p126_p12, %p125_p11 }
  0x1d   : > { %s867_s7 = scalar_select %p113_p10, %s721_s11, %s115_s3  }
  0x1e   : > { %s870_s8 = scalar_select %p53_p0, %s733_s14, %s55_s24  }
  0x1f   : > { %p132_p2 = scmp.eq.s32.totalorder %s436_s21, 3  ;;  %p471_p3 = scmp.lt.s32.totalorder %s753_s19, 4 }
  0x20   : > { %s152_s12 = sand.u32 1, %s733_s14   ;;  %s440_s28 = sshll.u32 %s745_s17, 1 }
  0x21   : > { %p876_p4 = por %p132_p2, %p131_p13  ;;  %s439_s26 = sshll.u32 %s152_s12, 2 }
  0x22   : > { %s163_s30 = sadd.s32 %s440_s28, %s836_s25  ;;  %s156_s5 = scalar_lea.vmem [#allocation3], %s439_s26 }
  0x23   : > { %s441_s4 = sshll.u32 %s163_s30, 2  ;;  %s169_s23 = sshll.u32 %s156_s5, 4  ;;  %s170_s23 = int_to_ptr.vmem [resolvable:$true] %s169_s23 }
  0x24   : > { %s165_s24 = scalar_lea.hbm %s983_s0, %s441_s4  ;;  %p887_p5 = pnand %p471_p3, %p844_p6 }
  0x25   : > { %s167_s18 = sshll.u32 %s165_s24, 4  ;;  %p443_p7 = scmp.ge.s32.totalorder %s753_s19, 1  ;;  %s168_s18 = int_to_ptr.hbm [resolvable:$true] %s167_s18 }
  0x26   : > { %p196_p8 = scmp.lt.s32.totalorder %s753_s19, 5  ;;  %s153_s25 = scalar_lea.sflag [#allocation4], %s152_s12 }
  0x27   : > { %463 = dma.hbm_to_vmem [thread:$0]  (!%p887_p5), %s168_s18, 64, %s170_s23, %s153_s25  }
  0x28   : > { %p197_p10 = pnand %p443_p7, %p196_p8  ;;  %s187_s22 = scalar_lea.hbm %s984_s1, %s163_s30 }
  0x29   : > { %s189_s4 = sshll.u32 %s187_s22, 4  ;;  %s179_s5 = scalar_lea.vmem [#allocation6], %s152_s12  ;;  %s190_s4 = int_to_ptr.hbm [resolvable:$true] %s189_s4 }
  0x2a   : > { %s191_s27 = sshll.u32 %s179_s5, 4  ;;  %s177_s3 = scalar_lea.sflag [#allocation7], %s152_s12  ;;  %s192_s27 = int_to_ptr.vmem [resolvable:$true] %s191_s27 }
  0x2b   : > { %466 = dma.hbm_to_vmem [thread:$0]  (!%p887_p5), %s190_s4, 16, %s192_s27, %s177_s3  }
  0x2c   : > { %200 = sbr.rel (%p197_p10) target bundleno = 316 (0x13c), region = 28  ;;  %s901_s24 = sand.u32 (!%p197_p10), 1, %s729_s13  }
  0x2d   : > { %s444_s18 = sshll.u32 (!%p197_p10), %s901_s24, 2  ;;  %s203_s23 = scalar_lea.sflag (!%p197_p10), [#allocation4], %s901_s24 }
  0x2e   : > { %s206_s25 = scalar_lea.vmem (!%p197_p10), [#allocation3], %s444_s18 }
  0x31   : > { %700 = dma.done.wait (%p851_p9), %s203_s23, 64  }
  0x32   : > { %702 = vsyncadd (%p851_p9), %s203_s23, 4294967232  ;;  %s213_s12 = scalar_lea.sflag [#allocation7], %s901_s24  ;;  %s215_s30 = scalar_lea.vmem [#allocation6], %s901_s24 }
  0x33   : > { %704 = dma.done.wait (%p851_p9), %s213_s12, 16  }
  0x34   : > { %706 = vsyncadd (%p851_p9), %s213_s12, 4294967280  ;;  %s238_s21 = sand.u32 1, %s717_s10   ;;  %p246_p6 = scmp.eq.s32.totalorder %s737_s15, 0 }
  0x35   : > { %s919_s26 = scalar_lea.vmem [#allocation8], %s238_s21  ;;  %v755_v0 = vmov (%p246_p6), 0.0  }
  0x36   : > { %251 = sbr.rel (!%p246_p6) target bundleno = 59 (0x3b), region = 40  ;;  %252 = vst [vmem:[#allocation2] sm:$0x1] (%p246_p6), %v755_v0 }
  0x3b PF: > { %v253_v1 = vld [vmem:[%s206_s25] sm:$0xf]  ;;  %vm255_vm0 = vcmask 1043456   ;;  %p300_p11 = scmp.eq.s32.totalorder %s737_s15, 1  ;;  %v276_v7 = vlaneseq  ;;  %v562_v11 = vld [vmem:[%s215_s30] ss:$0 sm:$0xff] }
  0x3c   : > { %v256_v2 = vsel %vm255_vm0, %v253_v1, -inf  ;;  %s446_s29 = sshll.u32 %s741_s16, 7  ;;  %vm306_vm3 = vcmask (%p300_p11), 1040384  }
  0x3d   : > { %v257_v3 = vrot.slane %v256_v2, 4  ;;  %v277_v10 = vshrl.u32 %v276_v7, 7  ;;  %v289_v28 = vand.u32 127, %v276_v7  ;;  %v292_v30 = vstv %s446_s29  ;;  %v297_v37 = vld [vmem:[#allocation2] sm:$0x1] }
  0x3f   : > { %v258_v4 = vmax.f32 %v256_v2, %v257_v3  ;;  %vm279_vm1 = vcmp.eq.s32.totalorder %v277_v10, %v562_v11  ;;  %v293_v32 = vadd.s32 %v292_v30, %v289_v28 }
  0x40   : > { %v280_v14 = vsel %vm279_vm1, %v253_v1, 0.0 }
  0x41   : > { %v259_v5 = vrot.slane %v258_v4, 2  ;;  %v281_v15 = vsel %vm255_vm0, %v280_v14, 0.0  ;;  %vm294_vm2 = vcmp.lt.s32.totalorder %v293_v32, 256 }
  0x42   : > { %v282_v18 = vrot.slane %v281_v15, 4 }
  0x43   : > { %v260_v6 = vmax.f32 %v258_v4, %v259_v5 }
  0x44   : > { %v283_v21 = vadd.f32 %v282_v18, %v281_v15 }
  0x45   : > { %v261_v8 = vrot.slane %v260_v6, 1 }
  0x46   : > { %v284_v24 = vrot.slane %v283_v21, 2 }
  0x47   : > { %v262_v9 = vmax.f32 %v260_v6, %v261_v8 }
  0x48   : > { %v285_v27 = vadd.f32 %v284_v24, %v283_v21 }
  0x49   : > { %v263_v12 = vsub.f32 %v253_v1, %v262_v9 }
  0x4a   : > { %v286_v29 = vrot.slane %v285_v27, 1 }
  0x4b   : > { %v264_v13 = vmul.f32 1.442695, %v263_v12 }
  0x4c   : > { %v287_v34 = vadd.f32 %v286_v29, %v285_v27 }
  0x4d   : > { %563 = vpow2.f32 %v264_v13 }
  0x53   : > { %v564_v16 = vpop.eup %563 }
  0x54   : > { %v266_v17 = vsel %vm255_vm0, %v564_v16, 0.0 }
  0x55   : > { %v267_v19 = vrot.slane %v266_v17, 4 }
  0x57   : > { %v268_v20 = vadd.f32 %v267_v19, %v266_v17 }
  0x59   : > { %v269_v22 = vrot.slane %v268_v20, 2 }
  0x5b   : > { %v270_v23 = vadd.f32 %v269_v22, %v268_v20 }
  0x5d   : > { %v271_v25 = vrot.slane %v270_v23, 1 }
  0x5f   : > { %v272_v26 = vadd.f32 %v271_v25, %v270_v23 }
  0x61   : > { %565 = vlog2.f32 %v272_v26 }
  0x67   : > { %v566_v31 = vpop.eup %565 }
  0x68   : > { %v274_v33 = vmul.f32 0.6931472, %v566_v31 }
  0x6a   : > { %v275_v35 = vadd.f32 %v274_v33, %v262_v9 }
  0x6c   : > { %v295_v36 = vsub.f32 %v275_v35, %v287_v34 }
  0x6d   : > { %304 = sbr.rel (!%p300_p11) target bundleno = 302 (0x12e), region = 44 }
  0x6e   : > { %v296_v38 = vsel %vm294_vm2, %v295_v36, 0.0 }
  0x6f   : > { %v298_v39 = vadd.f32 %v297_v37, %v296_v38 }
  0x71   : > { %299 = vst [vmem:[#allocation2] sm:$0x1] %v298_v39 }
  0x78   : > { %v305_v40 = vld [vmem:[#allocation2] sm:$0x1] }
  0x79   : > { %v307_v41 = vsel %vm306_vm3, %v305_v40, 0.0 }
  0x7a   : > { %308 = vadd.xlane.f32.xlu0 %v307_v41 }
  0xed   : > { %v309_v42 = vpop.xlane.xlu0 %308 }
  0xee   : > { %v310_v43 = vrot.slane %v309_v42, 4 }
  0xf0   : > { %v311_v44 = vadd.f32 %v310_v43, %v309_v42 }
  0xf2   : > { %v312_v45 = vrot.slane %v311_v44, 2 }
  0xf4   : > { %v313_v46 = vadd.f32 %v312_v45, %v311_v44 }
  0xf6   : > { %v314_v47 = vrot.slane %v313_v46, 1 }
  0xf8   : > { %v315_v48 = vadd.f32 %v314_v47, %v313_v46 }
  0xfa   : > { %452 = vpush %v315_v48 }
 0x12b   : > { %s453_s28 = spop %452 }
 0x12c   : > { %v317_v49 = vstv %s453_s28 }
 0x12d   : > { %318 = vst [vmem:[%s919_s26] sm:$0x1] %v317_v49 }
 0x12e PF: > { %s328_s4 = scalar_lea.hbm %s985_s2, %s741_s16  ;;  %s330_s5 = sshll.u32 %s919_s26, 4  ;;  %s331_s5 = int_to_ptr.vmem [resolvable:$true] %s330_s5 }
 0x12f   : > { %s332_s27 = sshll.u32 %s328_s4, 4  ;;  %s320_s3 = scalar_lea.sflag [#allocation5], %s238_s21  ;;  %s333_s27 = int_to_ptr.hbm [resolvable:$true] %s332_s27 }
 0x130   : > { %s641_s24 = sshra.s32 %s333_s27, 4  ;;  %s647_s12 = scalar_lea.hbm %s985_s2, 2  ;;  %s642_s24 = int_to_ptr.hbm [resolvable:$true] %s641_s24 }
 0x131   : > { %s643_s18 = scalar_lea.hbm %s642_s24, 1  ;;  %p648_p0 = scmp.lt.s32.totalorder %s642_s24, %s985_s2 }
 0x132   : > { %p644_p9 = scmp.ne.s32.totalorder %s642_s24, %s643_s18  ;;  %p649_p2 = scmp.lt.s32.totalorder %s647_s12, %s643_s18 }
 0x134   : > { %p645_p12 = pnand %p644_p9, %p862_p1  ;;  %p650_p3 = por %p649_p2, %p648_p0 }
 0x136   : > { %p646_p13 = pneg %p645_p12 }
 0x138   : > { %p651_p5 = pnand %p650_p3, %p646_p13 }
 0x13a   : > { %654 = shalt.err (!%p651_p5)
}
 0x13b   : > { %458 = dma.vmem_to_hbm [thread:$0]  (%p862_p1), %s331_s5, 16, %s333_s27, %s320_s3  }
 0x13c PF: > { %p472_p7 = scmp.ge.s32.totalorder %s753_s19, 2  ;;  %s344_s16 = sand.u32 1, %s713_s9  }
 0x13d   : > { %s345_s21 = scalar_lea.sflag [#allocation5], %s344_s16 }
 0x13e   : > { %p468_p8 = pnand %p472_p7, %p876_p4 }
 0x140   : > { %p469_p10 = pneg %p468_p8 }
 0x142   : > { %708 = dma.done.wait (%p469_p10), %s345_s21, 16  }
 0x143   : > { %710 = vsyncadd (%p469_p10), %s345_s21, 4294967280  ;;  %s21_s19 = sadd.s32 1, %s753_s19   ;;  %s997_s16 = sld [smem:[#allocation12_spill]] }
 0x144   : > { %p18_p6 = scmp.ge.s32.totalorder %s21_s19, 6   ;;  %s998_s6 = sld [smem:[#allocation13_spill]] }
 0x145   : > { %s999_s18 = sld [smem:[#allocation14_spill]]  ;;  %s1000_s9 = smov %s717_s10 }
 0x146   : > { %s1001_s10 = smov %s721_s11  ;;  %s1002_s11 = smov %s867_s7 }
 0x147   : > { %s1003_s12 = smov %s729_s13  ;;  %s1004_s13 = smov %s733_s14 }
 0x148   : > { %s1005_s14 = smov %s870_s8  ;;  %s1006_s15 = smov %s745_s17 }
 0x149   :  { %20 = sbr.rel (!%p18_p6) target bundleno = 11 (0xb), region = 94 }
 0x14a   : > { %s1007_s17 = smov %s998_s6 }
 0x14e   :  { %350 = vsyncpa [#allocation4], 1 }
 0x14f   :  { %352 = vsyncpa [#allocation4 + $0x1], 1 }
 0x150   :  { %353 = vsyncpa [#allocation7], 1 }
 0x151   :  { %355 = vsyncpa [#allocation7 + $0x1], 1 }
 0x152   :  { %356 = vsyncpa [#allocation5], 1 }
 0x153   :  { %358 = vsyncpa [#allocation5 + $0x1], 1 }

</bundles_post_ra>
